<compile_context>
chip_gen: v7x
topology: tpu7x:2x2x1
jax: 0.10.0
libtpu: 0.0.40
codegen_flags: <defaults>
</compile_context>

<pallas_src>
import jax
import jax.numpy as jnp
from jax.experimental import pallas as pl
from jax.experimental.pallas import tpu as pltpu

D_MODEL = 32
NHEAD = 4
DIM_FF = 64
HEAD_DIM = D_MODEL // NHEAD
LN_EPS = 1e-5

# ---- packed parameter slab layout (all weights pre-transposed: x @ W_t) ----
SLAB_W = 64                      # = max(2*D_MODEL, DIM_FF)
R_WQK = 0                        # (D, 2D)  rows 0..31,  cols 0..63  [s*Wq^T | Wk^T]
R_WV  = R_WQK + D_MODEL          # 32  (D, D)   cols 0..31
R_WO  = R_WV + D_MODEL           # 64  (D, D)   cols 0..31
R_W1  = R_WO + D_MODEL           # 96  (D, FF)  cols 0..63
R_W2  = R_W1 + D_MODEL           # 128 (FF, D)  rows 128..191, cols 0..31
R_BQK = R_W2 + DIM_FF            # 192 (1, 2D)  [s*bq | bk]
R_BV  = R_BQK + 1                # 193
R_BO  = R_BV + 1                 # 194
R_B1  = R_BO + 1                 # 195 (1, FF)
R_B2  = R_B1 + 1                 # 196
R_G1  = R_B2 + 1                 # 197
R_BE1 = R_G1 + 1                 # 198
R_G2  = R_BE1 + 1                # 199
R_BE2 = R_G2 + 1                 # 200
SLAB_ROWS = 208                  # padded to a multiple of 8


def encoder_layer_kernel(x_ref, pos_ref, p_ref, o_ref):
    """One batch element per grid step: x_ref/pos_ref/o_ref are (S, D)."""
    D = D_MODEL
    x = x_ref[...]                           # (S, D) original src (value path)
    qk_in = x + pos_ref[...]                 # WithPosEmbd: q/k get pos, value does not

    # Fused Q/K projection (one (S,D)x(D,2D) matmul), V separately.
    # Attention scale is already folded into the Wq^T / bq columns of the slab.
    qk = (jnp.dot(qk_in, p_ref[R_WQK:R_WQK + D, :],
                  preferred_element_type=jnp.float32)
          + p_ref[R_BQK:R_BQK + 1, :])                       # (S, 2D)
    v = (jnp.dot(x, p_ref[R_WV:R_WV + D, 0:D],
                 preferred_element_type=jnp.float32)
         + p_ref[R_BV:R_BV + 1, 0:D])                        # (S, D)

    q = qk[:, 0:D]
    k = qk[:, D:2 * D]

    # Per-head attention (static unroll, 4 heads).  No cross-batch masking is
    # needed since each grid step sees exactly one batch element.
    head_outs = []
    for h in range(NHEAD):
        sl = slice(h * HEAD_DIM, (h + 1) * HEAD_DIM)
        s = jnp.einsum("qd,kd->qk", q[:, sl], k[:, sl],
                       preferred_element_type=jnp.float32)   # (S, S)
        s = s - jnp.max(s, axis=-1, keepdims=True)
        e = jnp.exp(s)
        pattn = e * pl.reciprocal(jnp.sum(e, axis=-1, keepdims=True),
                                  approx=False)
        head_outs.append(jnp.dot(pattn, v[:, sl],
                                 preferred_element_type=jnp.float32))  # (S, hd)

    # Merge heads (lane concat) and do ONE output projection matmul.
    attn_cat = jnp.concatenate(head_outs, axis=-1)           # (S, D)
    attn = (jnp.dot(attn_cat, p_ref[R_WO:R_WO + D, 0:D],
                    preferred_element_type=jnp.float32)
            + p_ref[R_BO:R_BO + 1, 0:D])

    # TODO(synk): dropout1/dropout/dropout2 are identity (inference mode).
    # Residual + LayerNorm 1.
    y = x + attn
    mu = jnp.mean(y, axis=-1, keepdims=True)
    var = jnp.mean((y - mu) ** 2, axis=-1, keepdims=True)
    y = ((y - mu) * jax.lax.rsqrt(var + LN_EPS)
         * p_ref[R_G1:R_G1 + 1, 0:D] + p_ref[R_BE1:R_BE1 + 1, 0:D])

    # Feed-forward: linear1 -> relu -> linear2 (pre-transposed weights).
    h1 = (jnp.dot(y, p_ref[R_W1:R_W1 + D, :],
                  preferred_element_type=jnp.float32)
          + p_ref[R_B1:R_B1 + 1, :])
    h1 = jnp.maximum(h1, 0.0)
    z = (jnp.dot(h1, p_ref[R_W2:R_W2 + DIM_FF, 0:D],
                 preferred_element_type=jnp.float32)
         + p_ref[R_B2:R_B2 + 1, 0:D])

    # Residual + LayerNorm 2.
    y2 = y + z
    mu2 = jnp.mean(y2, axis=-1, keepdims=True)
    var2 = jnp.mean((y2 - mu2) ** 2, axis=-1, keepdims=True)
    o_ref[...] = ((y2 - mu2) * jax.lax.rsqrt(var2 + LN_EPS)
                  * p_ref[R_G2:R_G2 + 1, 0:D] + p_ref[R_BE2:R_BE2 + 1, 0:D])


@jax.jit
def transformer_encoder_layer(src, pos, packed):
    """src, pos: (S, B, D) float32; packed: (SLAB_ROWS, SLAB_W) weight slab."""
    S, B, D = src.shape
    # Single layout transpose so the batch dim leads and can be gridded
    # (tiling batch while it is the second-minor dim would break the (8,128)
    # block-shape rule).  No further reshapes; the per-batch gather is done by
    # the BlockSpec DMA.
    x = jnp.transpose(src, (1, 0, 2))        # (B, S, D)
    p = jnp.transpose(pos, (1, 0, 2))        # (B, S, D)

    flops = B * (2 * S * D * (2 * D)                       # fused q/k proj
                 + 2 * S * D * D                           # v proj
                 + NHEAD * 4 * S * S * HEAD_DIM            # scores + p@v
                 + 2 * S * D * D                           # merged out proj
                 + 4 * S * D * DIM_FF)                     # FFN
    cost = pl.CostEstimate(
        flops=flops,
        transcendentals=B * (NHEAD * S * S + NHEAD * S + 2 * S),
        bytes_accessed=4 * (3 * B * S * D + SLAB_ROWS * SLAB_W))

    out = pl.pallas_call(
        encoder_layer_kernel,
        out_shape=jax.ShapeDtypeStruct((B, S, D), jnp.float32),
        grid_spec=pltpu.PrefetchScalarGridSpec(
            num_scalar_prefetch=0,
            grid=(B,),                                      # one batch / step
            in_specs=[
                pl.BlockSpec((None, S, D), lambda b: (b, 0, 0)),
                pl.BlockSpec((None, S, D), lambda b: (b, 0, 0)),
                pl.BlockSpec((SLAB_ROWS, SLAB_W), lambda b: (0, 0)),  # resident
            ],
            out_specs=pl.BlockSpec((None, S, D), lambda b: (b, 0, 0)),
        ),
        compiler_params=pltpu.CompilerParams(
            dimension_semantics=("parallel",)),             # v7x: shard over TCs
        cost_estimate=cost,
    )(x, p, packed)
    return jnp.transpose(out, (1, 0, 2))                    # back to (S, B, D)


def init_params(key):
    ks = jax.random.split(key, 8)
    in_proj_w = jax.random.normal(ks[0], (3 * D_MODEL, D_MODEL), jnp.float32) * 0.05
    in_proj_b = jax.random.normal(ks[1], (3 * D_MODEL,), jnp.float32) * 0.02
    wo = jax.random.normal(ks[2], (D_MODEL, D_MODEL), jnp.float32) * 0.05
    bo = jax.random.normal(ks[3], (D_MODEL,), jnp.float32) * 0.02
    w1 = jax.random.normal(ks[4], (DIM_FF, D_MODEL), jnp.float32) * 0.05
    b1 = jax.random.normal(ks[5], (DIM_FF,), jnp.float32) * 0.02
    w2 = jax.random.normal(ks[6], (D_MODEL, DIM_FF), jnp.float32) * 0.05
    b2 = jax.random.normal(ks[7], (D_MODEL,), jnp.float32) * 0.02
    return {
        "wq": in_proj_w[:D_MODEL], "bq": in_proj_b[:D_MODEL].reshape(1, -1),
        "wk": in_proj_w[D_MODEL:2 * D_MODEL], "bk": in_proj_b[D_MODEL:2 * D_MODEL].reshape(1, -1),
        "wv": in_proj_w[2 * D_MODEL:], "bv": in_proj_b[2 * D_MODEL:].reshape(1, -1),
        "wo": wo, "bo": bo.reshape(1, -1),
        "w1": w1, "b1": b1.reshape(1, -1),
        "w2": w2, "b2": b2.reshape(1, -1),
        "g1": jnp.ones((1, D_MODEL), jnp.float32), "be1": jnp.zeros((1, D_MODEL), jnp.float32),
        "g2": jnp.ones((1, D_MODEL), jnp.float32), "be2": jnp.zeros((1, D_MODEL), jnp.float32),
    }


def pack_params(p):
    """Pre-transpose weights, fold attention scale into Wq/bq, pack one slab."""
    D, FF = D_MODEL, DIM_FF
    scale = 1.0 / (HEAD_DIM ** 0.5)
    slab = jnp.zeros((SLAB_ROWS, SLAB_W), jnp.float32)
    slab = slab.at[R_WQK:R_WQK + D, 0:2 * D].set(
        jnp.concatenate([p["wq"].T * scale, p["wk"].T], axis=1))
    slab = slab.at[R_WV:R_WV + D, 0:D].set(p["wv"].T)
    slab = slab.at[R_WO:R_WO + D, 0:D].set(p["wo"].T)
    slab = slab.at[R_W1:R_W1 + D, 0:FF].set(p["w1"].T)
    slab = slab.at[R_W2:R_W2 + FF, 0:D].set(p["w2"].T)
    slab = slab.at[R_BQK, 0:2 * D].set(
        jnp.concatenate([p["bq"][0] * scale, p["bk"][0]]))
    slab = slab.at[R_BV, 0:D].set(p["bv"][0])
    slab = slab.at[R_BO, 0:D].set(p["bo"][0])
    slab = slab.at[R_B1, 0:FF].set(p["b1"][0])
    slab = slab.at[R_B2, 0:D].set(p["b2"][0])
    slab = slab.at[R_G1, 0:D].set(p["g1"][0])
    slab = slab.at[R_BE1, 0:D].set(p["be1"][0])
    slab = slab.at[R_G2, 0:D].set(p["g2"][0])
    slab = slab.at[R_BE2, 0:D].set(p["be2"][0])
    return slab


def reference(src, pos, params):
    """Pure-JAX reference of forward_post (eval mode), (S, B, D) in/out."""
    S, B, D = src.shape
    H, hd = NHEAD, HEAD_DIM
    x = jnp.transpose(src, (1, 0, 2))
    p = jnp.transpose(pos, (1, 0, 2))
    qk_in = x + p
    scale = 1.0 / (hd ** 0.5)
    q = (qk_in @ params["wq"].T + params["bq"]) * scale
    k = qk_in @ params["wk"].T + params["bk"]
    v = x @ params["wv"].T + params["bv"]

    def split(t):
        return t.reshape(B, S, H, hd).transpose(0, 2, 1, 3)

    qh, kh, vh = split(q), split(k), split(v)
    s = jnp.einsum("bhqd,bhkd->bhqk", qh, kh)
    a = jax.nn.softmax(s, axis=-1)
    ao = jnp.einsum("bhqk,bhkd->bhqd", a, vh).transpose(0, 2, 1, 3).reshape(B, S, D)
    attn = ao @ params["wo"].T + params["bo"]

    def ln(t, g, b):
        mu = jnp.mean(t, axis=-1, keepdims=True)
        var = jnp.mean((t - mu) ** 2, axis=-1, keepdims=True)
        return (t - mu) * jax.lax.rsqrt(var + LN_EPS) * g + b

    y = ln(x + attn, params["g1"], params["be1"])
    z = jnp.maximum(y @ params["w1"].T + params["b1"], 0.0) @ params["w2"].T + params["b2"]
    out = ln(y + z, params["g2"], params["be2"])
    return jnp.transpose(out, (1, 0, 2))


if __name__ == "__main__":
    key = jax.random.PRNGKey(0)
    k_src, k_pos, k_par = jax.random.split(key, 3)

    SEQ, BATCH = 8, 2
    src = jax.random.normal(k_src, (SEQ, BATCH, D_MODEL), jnp.float32)
    pos = jax.random.normal(k_pos, (SEQ, BATCH, D_MODEL), jnp.float32) * 0.1
    params = init_params(k_par)
    packed = pack_params(params)

    out = transformer_encoder_layer(src, pos, packed)
    out = jax.block_until_ready(out)

    ref = jax.block_until_ready(reference(src, pos, params))
    assert out.shape == (SEQ, BATCH, D_MODEL)
    assert jnp.allclose(out, ref, atol=5e-3, rtol=5e-3), "mismatch vs JAX reference"

    print("KERNEL_OK")
</pallas_src>

<mosaic_0001>
module attributes {stable_mosaic.version = 11 : i64} {
  func.func @encoder_layer_kernel(%arg0: i32, %arg1: memref<1x8x32xf32, #tpu.memory_space<vmem>>, %arg2: memref<1x8x32xf32, #tpu.memory_space<vmem>>, %arg3: memref<208x64xf32, #tpu.memory_space<vmem>>, %arg4: memref<1x8x32xf32, #tpu.memory_space<vmem>>) attributes {dimension_semantics = [#tpu.dimension_semantics<parallel>], iteration_bounds = array<i64: 2>, scalar_prefetch = 0 : i64, scratch_operands = 0 : i64, tpu.core_type = #tpu.core_type<tc>, window_params = [{transform_indices = @transform_0, window_bounds = array<i64: 1, 8, 32>}, {transform_indices = @transform_1, window_bounds = array<i64: 1, 8, 32>}, {pipeline_mode = #tpu.pipeline_mode<synchronous>, transform_indices = @transform_2, window_bounds = array<i64: 208, 64>}, {transform_indices = @transform_3, window_bounds = array<i64: 1, 8, 32>}]} {
    %c0 = arith.constant 0 : index
    %c0_0 = arith.constant 0 : index
    %c0_1 = arith.constant 0 : index
    %0 = vector.load %arg1[%c0, %c0_0, %c0_1] : memref<1x8x32xf32, #tpu.memory_space<vmem>>, vector<1x8x32xf32>
    %1 = vector.shape_cast %0 : vector<1x8x32xf32> to vector<8x32xf32>
    %c0_2 = arith.constant 0 : index
    %c0_3 = arith.constant 0 : index
    %c0_4 = arith.constant 0 : index
    %2 = vector.load %arg2[%c0_2, %c0_3, %c0_4] : memref<1x8x32xf32, #tpu.memory_space<vmem>>, vector<1x8x32xf32>
    %3 = vector.shape_cast %2 : vector<1x8x32xf32> to vector<8x32xf32>
    %4 = arith.addf %1, %3 : vector<8x32xf32>
    %c0_5 = arith.constant 0 : index
    %c0_6 = arith.constant 0 : index
    %5 = vector.load %arg3[%c0_5, %c0_6] : memref<208x64xf32, #tpu.memory_space<vmem>>, vector<32x64xf32>
    %cst = arith.constant dense<0.000000e+00> : vector<8x64xf32>
    %6 = tpu.matmul %4, %5, %cst {dimension_numbers = #tpu.dot_dimension_numbers<[1], [0], [0], [1], [0, 0, 1, 1], [], []>} : vector<8x32xf32>, vector<32x64xf32>, vector<8x64xf32> -> vector<8x64xf32>
    %c192 = arith.constant 192 : index
    %c0_7 = arith.constant 0 : index
    %7 = vector.load %arg3[%c192, %c0_7] : memref<208x64xf32, #tpu.memory_space<vmem>>, vector<1x64xf32>
    %8 = vector.broadcast %7 : vector<1x64xf32> to vector<8x64xf32>
    %9 = arith.addf %6, %8 : vector<8x64xf32>
    %c32 = arith.constant 32 : index
    %c0_8 = arith.constant 0 : index
    %10 = vector.load %arg3[%c32, %c0_8] : memref<208x64xf32, #tpu.memory_space<vmem>>, vector<32x32xf32>
    %cst_9 = arith.constant dense<0.000000e+00> : vector<8x32xf32>
    %11 = tpu.matmul %1, %10, %cst_9 {dimension_numbers = #tpu.dot_dimension_numbers<[1], [0], [0], [1], [0, 0, 1, 1], [], []>} : vector<8x32xf32>, vector<32x32xf32>, vector<8x32xf32> -> vector<8x32xf32>
    %c193 = arith.constant 193 : index
    %c0_10 = arith.constant 0 : index
    %12 = vector.load %arg3[%c193, %c0_10] : memref<208x64xf32, #tpu.memory_space<vmem>>, vector<1x32xf32>
    %13 = vector.broadcast %12 : vector<1x32xf32> to vector<8x32xf32>
    %14 = arith.addf %11, %13 : vector<8x32xf32>
    %15 = vector.extract_strided_slice %9 {offsets = [0, 0], sizes = [8, 32], strides = [1, 1]} : vector<8x64xf32> to vector<8x32xf32>
    %16 = vector.extract_strided_slice %9 {offsets = [0, 32], sizes = [8, 32], strides = [1, 1]} : vector<8x64xf32> to vector<8x32xf32>
    %17 = vector.extract_strided_slice %15 {offsets = [0, 0], sizes = [8, 8], strides = [1, 1]} : vector<8x32xf32> to vector<8x8xf32>
    %18 = vector.extract_strided_slice %16 {offsets = [0, 0], sizes = [8, 8], strides = [1, 1]} : vector<8x32xf32> to vector<8x8xf32>
    "tpu.trace_start"() <{level = 10 : i32, message = "qd,kd->qk"}> : () -> ()
    %cst_11 = arith.constant dense<0.000000e+00> : vector<8x8xf32>
    %19 = tpu.matmul %17, %18, %cst_11 {dimension_numbers = #tpu.dot_dimension_numbers<[1], [1], [0], [0], [0, 0, 1, 0], [], []>} : vector<8x8xf32>, vector<8x8xf32>, vector<8x8xf32> -> vector<8x8xf32>
    "tpu.trace_stop"() : () -> ()
    %cst_12 = arith.constant dense<0xFF800000> : vector<8xf32>
    %20 = vector.multi_reduction <maximumf>, %19, %cst_12 [1] : vector<8x8xf32> to vector<8xf32>
    %21 = vector.shape_cast %20 : vector<8xf32> to vector<8x1xf32>
    %22 = vector.broadcast %21 : vector<8x1xf32> to vector<8x8xf32>
    %23 = arith.subf %19, %22 : vector<8x8xf32>
    %24 = math.exp %23 : vector<8x8xf32>
    %cst_13 = arith.constant dense<0.000000e+00> : vector<8xf32>
    %25 = vector.multi_reduction <add>, %24, %cst_13 [1] : vector<8x8xf32> to vector<8xf32>
    %26 = vector.shape_cast %25 : vector<8xf32> to vector<8x1xf32>
    %27 = tpu.reciprocal %26 : vector<8x1xf32> -> vector<8x1xf32>
    %28 = vector.broadcast %27 : vector<8x1xf32> to vector<8x8xf32>
    %29 = arith.mulf %24, %28 : vector<8x8xf32>
    %30 = vector.extract_strided_slice %14 {offsets = [0, 0], sizes = [8, 8], strides = [1, 1]} : vector<8x32xf32> to vector<8x8xf32>
    %cst_14 = arith.constant dense<0.000000e+00> : vector<8x8xf32>
    %31 = tpu.matmul %29, %30, %cst_14 {dimension_numbers = #tpu.dot_dimension_numbers<[1], [0], [0], [1], [0, 0, 1, 1], [], []>} : vector<8x8xf32>, vector<8x8xf32>, vector<8x8xf32> -> vector<8x8xf32>
    %32 = vector.extract_strided_slice %15 {offsets = [0, 8], sizes = [8, 8], strides = [1, 1]} : vector<8x32xf32> to vector<8x8xf32>
    %33 = vector.extract_strided_slice %16 {offsets = [0, 8], sizes = [8, 8], strides = [1, 1]} : vector<8x32xf32> to vector<8x8xf32>
    "tpu.trace_start"() <{level = 10 : i32, message = "qd,kd->qk"}> : () -> ()
    %cst_15 = arith.constant dense<0.000000e+00> : vector<8x8xf32>
    %34 = tpu.matmul %32, %33, %cst_15 {dimension_numbers = #tpu.dot_dimension_numbers<[1], [1], [0], [0], [0, 0, 1, 0], [], []>} : vector<8x8xf32>, vector<8x8xf32>, vector<8x8xf32> -> vector<8x8xf32>
    "tpu.trace_stop"() : () -> ()
    %cst_16 = arith.constant dense<0xFF800000> : vector<8xf32>
    %35 = vector.multi_reduction <maximumf>, %34, %cst_16 [1] : vector<8x8xf32> to vector<8xf32>
    %36 = vector.shape_cast %35 : vector<8xf32> to vector<8x1xf32>
    %37 = vector.broadcast %36 : vector<8x1xf32> to vector<8x8xf32>
    %38 = arith.subf %34, %37 : vector<8x8xf32>
    %39 = math.exp %38 : vector<8x8xf32>
    %cst_17 = arith.constant dense<0.000000e+00> : vector<8xf32>
    %40 = vector.multi_reduction <add>, %39, %cst_17 [1] : vector<8x8xf32> to vector<8xf32>
    %41 = vector.shape_cast %40 : vector<8xf32> to vector<8x1xf32>
    %42 = tpu.reciprocal %41 : vector<8x1xf32> -> vector<8x1xf32>
    %43 = vector.broadcast %42 : vector<8x1xf32> to vector<8x8xf32>
    %44 = arith.mulf %39, %43 : vector<8x8xf32>
    %45 = vector.extract_strided_slice %14 {offsets = [0, 8], sizes = [8, 8], strides = [1, 1]} : vector<8x32xf32> to vector<8x8xf32>
    %cst_18 = arith.constant dense<0.000000e+00> : vector<8x8xf32>
    %46 = tpu.matmul %44, %45, %cst_18 {dimension_numbers = #tpu.dot_dimension_numbers<[1], [0], [0], [1], [0, 0, 1, 1], [], []>} : vector<8x8xf32>, vector<8x8xf32>, vector<8x8xf32> -> vector<8x8xf32>
    %47 = vector.extract_strided_slice %15 {offsets = [0, 16], sizes = [8, 8], strides = [1, 1]} : vector<8x32xf32> to vector<8x8xf32>
    %48 = vector.extract_strided_slice %16 {offsets = [0, 16], sizes = [8, 8], strides = [1, 1]} : vector<8x32xf32> to vector<8x8xf32>
    "tpu.trace_start"() <{level = 10 : i32, message = "qd,kd->qk"}> : () -> ()
    %cst_19 = arith.constant dense<0.000000e+00> : vector<8x8xf32>
    %49 = tpu.matmul %47, %48, %cst_19 {dimension_numbers = #tpu.dot_dimension_numbers<[1], [1], [0], [0], [0, 0, 1, 0], [], []>} : vector<8x8xf32>, vector<8x8xf32>, vector<8x8xf32> -> vector<8x8xf32>
    "tpu.trace_stop"() : () -> ()
    %cst_20 = arith.constant dense<0xFF800000> : vector<8xf32>
    %50 = vector.multi_reduction <maximumf>, %49, %cst_20 [1] : vector<8x8xf32> to vector<8xf32>
    %51 = vector.shape_cast %50 : vector<8xf32> to vector<8x1xf32>
    %52 = vector.broadcast %51 : vector<8x1xf32> to vector<8x8xf32>
    %53 = arith.subf %49, %52 : vector<8x8xf32>
    %54 = math.exp %53 : vector<8x8xf32>
    %cst_21 = arith.constant dense<0.000000e+00> : vector<8xf32>
    %55 = vector.multi_reduction <add>, %54, %cst_21 [1] : vector<8x8xf32> to vector<8xf32>
    %56 = vector.shape_cast %55 : vector<8xf32> to vector<8x1xf32>
    %57 = tpu.reciprocal %56 : vector<8x1xf32> -> vector<8x1xf32>
    %58 = vector.broadcast %57 : vector<8x1xf32> to vector<8x8xf32>
    %59 = arith.mulf %54, %58 : vector<8x8xf32>
    %60 = vector.extract_strided_slice %14 {offsets = [0, 16], sizes = [8, 8], strides = [1, 1]} : vector<8x32xf32> to vector<8x8xf32>
    %cst_22 = arith.constant dense<0.000000e+00> : vector<8x8xf32>
    %61 = tpu.matmul %59, %60, %cst_22 {dimension_numbers = #tpu.dot_dimension_numbers<[1], [0], [0], [1], [0, 0, 1, 1], [], []>} : vector<8x8xf32>, vector<8x8xf32>, vector<8x8xf32> -> vector<8x8xf32>
    %62 = vector.extract_strided_slice %15 {offsets = [0, 24], sizes = [8, 8], strides = [1, 1]} : vector<8x32xf32> to vector<8x8xf32>
    %63 = vector.extract_strided_slice %16 {offsets = [0, 24], sizes = [8, 8], strides = [1, 1]} : vector<8x32xf32> to vector<8x8xf32>
    "tpu.trace_start"() <{level = 10 : i32, message = "qd,kd->qk"}> : () -> ()
    %cst_23 = arith.constant dense<0.000000e+00> : vector<8x8xf32>
    %64 = tpu.matmul %62, %63, %cst_23 {dimension_numbers = #tpu.dot_dimension_numbers<[1], [1], [0], [0], [0, 0, 1, 0], [], []>} : vector<8x8xf32>, vector<8x8xf32>, vector<8x8xf32> -> vector<8x8xf32>
    "tpu.trace_stop"() : () -> ()
    %cst_24 = arith.constant dense<0xFF800000> : vector<8xf32>
    %65 = vector.multi_reduction <maximumf>, %64, %cst_24 [1] : vector<8x8xf32> to vector<8xf32>
    %66 = vector.shape_cast %65 : vector<8xf32> to vector<8x1xf32>
    %67 = vector.broadcast %66 : vector<8x1xf32> to vector<8x8xf32>
    %68 = arith.subf %64, %67 : vector<8x8xf32>
    %69 = math.exp %68 : vector<8x8xf32>
    %cst_25 = arith.constant dense<0.000000e+00> : vector<8xf32>
    %70 = vector.multi_reduction <add>, %69, %cst_25 [1] : vector<8x8xf32> to vector<8xf32>
    %71 = vector.shape_cast %70 : vector<8xf32> to vector<8x1xf32>
    %72 = tpu.reciprocal %71 : vector<8x1xf32> -> vector<8x1xf32>
    %73 = vector.broadcast %72 : vector<8x1xf32> to vector<8x8xf32>
    %74 = arith.mulf %69, %73 : vector<8x8xf32>
    %75 = vector.extract_strided_slice %14 {offsets = [0, 24], sizes = [8, 8], strides = [1, 1]} : vector<8x32xf32> to vector<8x8xf32>
    %cst_26 = arith.constant dense<0.000000e+00> : vector<8x8xf32>
    %76 = tpu.matmul %74, %75, %cst_26 {dimension_numbers = #tpu.dot_dimension_numbers<[1], [0], [0], [1], [0, 0, 1, 1], [], []>} : vector<8x8xf32>, vector<8x8xf32>, vector<8x8xf32> -> vector<8x8xf32>
    %77 = tpu.concatenate %31, %46, %61, %76 in 1 : vector<8x8xf32>, vector<8x8xf32>, vector<8x8xf32>, vector<8x8xf32> -> vector<8x32xf32>
    %c64 = arith.constant 64 : index
    %c0_27 = arith.constant 0 : index
    %78 = vector.load %arg3[%c64, %c0_27] : memref<208x64xf32, #tpu.memory_space<vmem>>, vector<32x32xf32>
    %cst_28 = arith.constant dense<0.000000e+00> : vector<8x32xf32>
    %79 = tpu.matmul %77, %78, %cst_28 {dimension_numbers = #tpu.dot_dimension_numbers<[1], [0], [0], [1], [0, 0, 1, 1], [], []>} : vector<8x32xf32>, vector<32x32xf32>, vector<8x32xf32> -> vector<8x32xf32>
    %c194 = arith.constant 194 : index
    %c0_29 = arith.constant 0 : index
    %80 = vector.load %arg3[%c194, %c0_29] : memref<208x64xf32, #tpu.memory_space<vmem>>, vector<1x32xf32>
    %81 = vector.broadcast %80 : vector<1x32xf32> to vector<8x32xf32>
    %82 = arith.addf %79, %81 : vector<8x32xf32>
    %83 = arith.addf %1, %82 : vector<8x32xf32>
    %cst_30 = arith.constant dense<0.000000e+00> : vector<8xf32>
    %84 = vector.multi_reduction <add>, %83, %cst_30 [1] : vector<8x32xf32> to vector<8xf32>
    %85 = vector.shape_cast %84 : vector<8xf32> to vector<8x1xf32>
    %cst_31 = arith.constant 3.200000e+01 : f32
    %86 = vector.broadcast %cst_31 : f32 to vector<8x1xf32>
    %87 = arith.divf %85, %86 : vector<8x1xf32>
    %88 = vector.broadcast %87 : vector<8x1xf32> to vector<8x32xf32>
    %89 = arith.subf %83, %88 : vector<8x32xf32>
    %90 = arith.mulf %89, %89 : vector<8x32xf32>
    %cst_32 = arith.constant dense<0.000000e+00> : vector<8xf32>
    %91 = vector.multi_reduction <add>, %90, %cst_32 [1] : vector<8x32xf32> to vector<8xf32>
    %92 = vector.shape_cast %91 : vector<8xf32> to vector<8x1xf32>
    %cst_33 = arith.constant 3.200000e+01 : f32
    %93 = vector.broadcast %cst_33 : f32 to vector<8x1xf32>
    %94 = arith.divf %92, %93 : vector<8x1xf32>
    %95 = vector.broadcast %87 : vector<8x1xf32> to vector<8x32xf32>
    %96 = arith.subf %83, %95 : vector<8x32xf32>
    %cst_34 = arith.constant 9.99999974E-6 : f32
    %97 = vector.broadcast %cst_34 : f32 to vector<8x1xf32>
    %98 = arith.addf %94, %97 : vector<8x1xf32>
    %99 = math.rsqrt %98 : vector<8x1xf32>
    %100 = vector.broadcast %99 : vector<8x1xf32> to vector<8x32xf32>
    %101 = arith.mulf %96, %100 : vector<8x32xf32>
    %c197 = arith.constant 197 : index
    %c0_35 = arith.constant 0 : index
    %102 = vector.load %arg3[%c197, %c0_35] : memref<208x64xf32, #tpu.memory_space<vmem>>, vector<1x32xf32>
    %103 = vector.broadcast %102 : vector<1x32xf32> to vector<8x32xf32>
    %104 = arith.mulf %101, %103 : vector<8x32xf32>
    %c198 = arith.constant 198 : index
    %c0_36 = arith.constant 0 : index
    %105 = vector.load %arg3[%c198, %c0_36] : memref<208x64xf32, #tpu.memory_space<vmem>>, vector<1x32xf32>
    %106 = vector.broadcast %105 : vector<1x32xf32> to vector<8x32xf32>
    %107 = arith.addf %104, %106 : vector<8x32xf32>
    %c96 = arith.constant 96 : index
    %c0_37 = arith.constant 0 : index
    %108 = vector.load %arg3[%c96, %c0_37] : memref<208x64xf32, #tpu.memory_space<vmem>>, vector<32x64xf32>
    %cst_38 = arith.constant dense<0.000000e+00> : vector<8x64xf32>
    %109 = tpu.matmul %107, %108, %cst_38 {dimension_numbers = #tpu.dot_dimension_numbers<[1], [0], [0], [1], [0, 0, 1, 1], [], []>} : vector<8x32xf32>, vector<32x64xf32>, vector<8x64xf32> -> vector<8x64xf32>
    %c195 = arith.constant 195 : index
    %c0_39 = arith.constant 0 : index
    %110 = vector.load %arg3[%c195, %c0_39] : memref<208x64xf32, #tpu.memory_space<vmem>>, vector<1x64xf32>
    %111 = vector.broadcast %110 : vector<1x64xf32> to vector<8x64xf32>
    %112 = arith.addf %109, %111 : vector<8x64xf32>
    %cst_40 = arith.constant 0.000000e+00 : f32
    %113 = vector.broadcast %cst_40 : f32 to vector<8x64xf32>
    %114 = arith.maximumf %112, %113 : vector<8x64xf32>
    %c128 = arith.constant 128 : index
    %c0_41 = arith.constant 0 : index
    %115 = vector.load %arg3[%c128, %c0_41] : memref<208x64xf32, #tpu.memory_space<vmem>>, vector<64x32xf32>
    %cst_42 = arith.constant dense<0.000000e+00> : vector<8x32xf32>
    %116 = tpu.matmul %114, %115, %cst_42 {dimension_numbers = #tpu.dot_dimension_numbers<[1], [0], [0], [1], [0, 0, 1, 1], [], []>} : vector<8x64xf32>, vector<64x32xf32>, vector<8x32xf32> -> vector<8x32xf32>
    %c196 = arith.constant 196 : index
    %c0_43 = arith.constant 0 : index
    %117 = vector.load %arg3[%c196, %c0_43] : memref<208x64xf32, #tpu.memory_space<vmem>>, vector<1x32xf32>
    %118 = vector.broadcast %117 : vector<1x32xf32> to vector<8x32xf32>
    %119 = arith.addf %116, %118 : vector<8x32xf32>
    %120 = arith.addf %107, %119 : vector<8x32xf32>
    %cst_44 = arith.constant dense<0.000000e+00> : vector<8xf32>
    %121 = vector.multi_reduction <add>, %120, %cst_44 [1] : vector<8x32xf32> to vector<8xf32>
    %122 = vector.shape_cast %121 : vector<8xf32> to vector<8x1xf32>
    %cst_45 = arith.constant 3.200000e+01 : f32
    %123 = vector.broadcast %cst_45 : f32 to vector<8x1xf32>
    %124 = arith.divf %122, %123 : vector<8x1xf32>
    %125 = vector.broadcast %124 : vector<8x1xf32> to vector<8x32xf32>
    %126 = arith.subf %120, %125 : vector<8x32xf32>
    %127 = arith.mulf %126, %126 : vector<8x32xf32>
    %cst_46 = arith.constant dense<0.000000e+00> : vector<8xf32>
    %128 = vector.multi_reduction <add>, %127, %cst_46 [1] : vector<8x32xf32> to vector<8xf32>
    %129 = vector.shape_cast %128 : vector<8xf32> to vector<8x1xf32>
    %cst_47 = arith.constant 3.200000e+01 : f32
    %130 = vector.broadcast %cst_47 : f32 to vector<8x1xf32>
    %131 = arith.divf %129, %130 : vector<8x1xf32>
    %132 = vector.broadcast %124 : vector<8x1xf32> to vector<8x32xf32>
    %133 = arith.subf %120, %132 : vector<8x32xf32>
    %cst_48 = arith.constant 9.99999974E-6 : f32
    %134 = vector.broadcast %cst_48 : f32 to vector<8x1xf32>
    %135 = arith.addf %131, %134 : vector<8x1xf32>
    %136 = math.rsqrt %135 : vector<8x1xf32>
    %137 = vector.broadcast %136 : vector<8x1xf32> to vector<8x32xf32>
    %138 = arith.mulf %133, %137 : vector<8x32xf32>
    %c199 = arith.constant 199 : index
    %c0_49 = arith.constant 0 : index
    %139 = vector.load %arg3[%c199, %c0_49] : memref<208x64xf32, #tpu.memory_space<vmem>>, vector<1x32xf32>
    %140 = vector.broadcast %139 : vector<1x32xf32> to vector<8x32xf32>
    %141 = arith.mulf %138, %140 : vector<8x32xf32>
    %c200 = arith.constant 200 : index
    %c0_50 = arith.constant 0 : index
    %142 = vector.load %arg3[%c200, %c0_50] : memref<208x64xf32, #tpu.memory_space<vmem>>, vector<1x32xf32>
    %143 = vector.broadcast %142 : vector<1x32xf32> to vector<8x32xf32>
    %144 = arith.addf %141, %143 : vector<8x32xf32>
    %c0_51 = arith.constant 0 : index
    %c0_52 = arith.constant 0 : index
    %c0_53 = arith.constant 0 : index
    %145 = vector.load %arg4[%c0_51, %c0_52, %c0_53] : memref<1x8x32xf32, #tpu.memory_space<vmem>>, vector<1x8x32xf32>
    %146 = vector.shape_cast %145 : vector<1x8x32xf32> to vector<8x32xf32>
    %147 = vector.shape_cast %144 : vector<8x32xf32> to vector<1x8x32xf32>
    tpu.vector_store %arg4[%c0_51, %c0_52, %c0_53], %147 {strides = array<i32>} : memref<1x8x32xf32, #tpu.memory_space<vmem>>, vector<1x8x32xf32>,
    return
  }
  func.func @transform_0(%arg0: i32) -> (i32, i32, i32) {
    %c0_i32 = arith.constant 0 : i32
    %c0_i32_0 = arith.constant 0 : i32
    %c0_i32_1 = arith.constant 0 : i32
    return %arg0, %c0_i32, %c0_i32_0 : i32, i32, i32
  }
  func.func @transform_1(%arg0: i32) -> (i32, i32, i32) {
    %c0_i32 = arith.constant 0 : i32
    %c0_i32_0 = arith.constant 0 : i32
    %c0_i32_1 = arith.constant 0 : i32
    return %arg0, %c0_i32, %c0_i32_0 : i32, i32, i32
  }
  func.func @transform_2(%arg0: i32) -> (i32, i32) {
    %c0_i32 = arith.constant 0 : i32
    %c0_i32_0 = arith.constant 0 : i32
    %c0_i32_1 = arith.constant 0 : i32
    return %c0_i32, %c0_i32_0 : i32, i32
  }
  func.func @transform_3(%arg0: i32) -> (i32, i32, i32) {
    %c0_i32 = arith.constant 0 : i32
    %c0_i32_0 = arith.constant 0 : i32
    %c0_i32_1 = arith.constant 0 : i32
    return %arg0, %c0_i32, %c0_i32_0 : i32, i32, i32
  }
}

</mosaic_0001>

<bundles_post_ra>
// kernel: transformer_encoder_layer.1
= control target key start
LH: loop header
LB: loop body
LE: loop exit
PB: predicated region body
PF: predicated region fallthrough
CT: control target
= control target key end

     0   :  { %s1699_s12 = smov 0   ;;  %s1910_s0 = inlined_call_operand.vmem [shape: f32[2,8,32], index: 0, kind: input, shape index: {}]   ;;  %s1911_s1 = inlined_call_operand.vmem [shape: f32[2,8,32], index: 1, kind: input, shape index: {}]   ;;  %s1912_s2 = inlined_call_operand.vmem [shape: f32[208,64], index: 2, kind: input, shape index: {}]   ;;  %s1913_s3 = inlined_call_operand.vmem [shape: f32[2,8,32], index: 3, kind: output, shape index: {}]  }
   0x1 LB: > { %s1397_s13 = sadd.s32 4294967295, %s1664_s12   ;;  %p1401_p0 = scmp.ge.s32.totalorder %s1664_s12, 1  ;;  %s1664_s12 = sphi %s1699_s12, %s13_s12  }
   0x2   : > { %p145_p1 = scmp.lt.s32.totalorder %s1664_s12, 3 }
   0x4   : > { %p146_p2 = pnand %p1401_p0, %p145_p1 }
   0x5   : > { %v186_v0 = vld [vmem:[%s1912_s2] sm:$0xff] (!%p146_p2)  ;;  %v187_v1 = vld [vmem:[%s1912_s2 + $0x8] sm:$0xff] (!%p146_p2)  ;;  %v188_v2 = vld [vmem:[%s1912_s2 + $0x10] sm:$0xff] (!%p146_p2)  ;;  %v1666_v3 = vmov (!%p146_p2), 0.0|0.0   ;;  %vm1667_vm0 = vmmov (!%p146_p2), 0   ;;  %v1668_v6 = vmov (!%p146_p2), 0.0  }
   0x6   : > { %149 = sbr.rel (%p146_p2) target bundleno = 2538 (0x9ea), region = 32  ;;  %1581 = vmatprep.subr.bf16.mxu1 (!%p146_p2), %v1666_v3  ;;  %v1582_v4 = vpack.c.bf16 (!%p146_p2), %v187_v1, %v186_v0  ;;  %v189_v5 = vld [vmem:[%s1912_s2 + $0x18] sm:$0xff] (!%p146_p2)  ;;  %1486 = vmatprep.mubr.msk.f32.mxu1 (!%p146_p2), %vm1667_vm0, %v1668_v6  ;;  %p171_p3 = scmp.lt.s32.totalorder (!%p146_p2), %s1397_s13, 1  ;;  %vm195_vm1 = vcmask (!%p146_p2), 261120   ;;  %v1405_v11 = vld [vmem:[%s1912_s2 + $0xc0] ss:$0 sm:$0xff] (!%p146_p2) }
   0x7   : > { %1500 = vmatprep.subr.mxu0 (!%p146_p2), %v1668_v6  ;;  %1502 = vmatprep.mubr.msk.f32.mxu0 (!%p146_p2), %vm1667_vm0, %v1668_v6  ;;  %v1585_v7 = vpack.c.bf16 (!%p146_p2), %v189_v5, %v188_v2  ;;  %s1669_s4 = smov (!%p146_p2), 120   ;;  %s1670_s5 = smov (!%p146_p2), 96   ;;  %v269_v15 = vld [vmem:[%s1912_s2 + $0x20] sm:$0xff] (!%p146_p2)  ;;  %v270_v16 = vld [vmem:[%s1912_s2 + $0x28] sm:$0xff] (!%p146_p2)  ;;  %v271_v17 = vld [vmem:[%s1912_s2 + $0x30] sm:$0xff] (!%p146_p2)  ;;  %vm354_vm2 = vcmask (!%p146_p2), 64512  }
   0x8   : > { %1583 = vmatpush3.bf16.msra.mxu1 (!%p146_p2), %v1582_v4  ;;  %v1588_v18 = vpack.c.bf16 (!%p146_p2), %v270_v16, %v269_v15  ;;  %v272_v19 = vld [vmem:[%s1912_s2 + $0x38] sm:$0xff] (!%p146_p2)  ;;  %s1671_s15 = smov (!%p146_p2), 80   ;;  %s1672_s16 = smov (!%p146_p2), 88   ;;  %v1407_v40 = vld [vmem:[%s1912_s2 + $0xc1] ss:$0 sm:$0xff] (!%p146_p2)  ;;  %vm1022_vm3 = vcmask (!%p146_p2), 130048  }
   0x9   : > { %1584 = vmatprep.subr.bf16.mxu1 (!%p146_p2), %v1666_v3  ;;  %v1591_v20 = vpack.c.bf16 (!%p146_p2), %v272_v19, %v271_v17  ;;  %s1673_s17 = smov (!%p146_p2), 72   ;;  %s1674_s18 = smov (!%p146_p2), 112   ;;  %v1027_v19 = vld [vmem:[%s1912_s2 + $0x48] sm:$0xff] (!%p146_p2)  ;;  %vm1024_vm4 = vcmask (!%p146_p2), 195584   ;;  %vm1231_vm5 = vcmask (!%p146_p2), 523264  }
   0xa   : > { %s1675_s19 = smov (!%p146_p2), 104   ;;  %s1678_s6 = smov (!%p146_p2), 24  }
   0xc   : > { %1586 = vmatpush3.bf16.msra.mxu1 (!%p146_p2), %v1585_v7 }
   0xd   : > { %s1915_s13 = smov (!%p171_p3, %s1397_s13), 1  ;;  %1587 = vmatprep.subr.bf16.mxu1 %v1666_v3 }
   0xe   : > { %s1726_s22 = sshll.u32 %s1915_s13, 3 }
   0xf   : > { %s174_s25 = scalar_lea.vmem %s1910_s0, %s1726_s22  ;;  %s178_s28 = scalar_lea.vmem %s1911_s1, %s1726_s22 }
  0x10   : > { %v1736_v8 = vld [vmem:[%s174_s25] sm:$0xff]  ;;  %s182_s24 = scalar_lea.vmem %s1913_s3, %s1726_s22 }
  0x11   : > { %v184_v9 = vld [vmem:[%s178_s28] sm:$0xff] }
  0x12   : > { %v185_v10 = vadd.f32 %v184_v9, %v1736_v8 }
  0x14   : > { %1487 = vmatmul.mubr.msk.f32.vlgmr.msra.gmra.mrb[0].mxu1 %vm195_vm1, %v185_v10 }
  0x15   : > { %1497 = vmatprep.mubr.msk.f32.mxu1 %vm1667_vm0, %v1668_v6  ;;  %1589 = vmatpush3.bf16.msra.mxu1 %v1588_v18  ;;  %v1026_v18 = vld [vmem:[%s1912_s2 + $0x40] sm:$0xff] }
  0x16   : > { %1590 = vmatprep.subr.bf16.mxu1 %v1666_v3 }
  0x19   : > { %1592 = vmatpush3.bf16.msra.mxu1 %v1591_v20  ;;  %v1028_v20 = vld [vmem:[%s1912_s2 + $0x50] sm:$0xff] }
  0x1a   : > { %1505 = vmatprep.subr.mxu1 %v1668_v6 }
  0x1c   : > { %1498 = vmatmul.mubr.msk.f32.vlgmr.msra.gmra.mrb[2].mxu1 %vm195_vm1, %v1736_v8 }
  0x1d   : > { %1507 = vmatprep.mubr.msk.f32.mxu1 %vm1667_vm0, %v1668_v6 }
  0xe7   : > { %v265_v12 = vpop.f32.mrb[0].mxu1 }
  0xe8   : > { %v266_v13 = vadd.f32 %v1405_v11, %v265_v12  ;;  %v1488_v14 = vpop.f32.mrb[1].mxu1 }
  0xea   : > { %513 = vrot.lane.b32.xlu1 %v266_v13, %s1669_s4  ;;  %352 = vrot.lane.b32.xlu0 %v266_v13, %s1670_s5  ;;  %s1677_s5 = smov 16  }
  0xee   : > { %681 = vrot.lane.b32.xlu1 %v266_v13, %s1671_s15  ;;  %515 = vrot.lane.b32.xlu0 %v266_v13, %s1672_s16 }
  0xef   : > { %v347_v41 = vpop.f32.mrb[2].mxu1 }
  0xf0   : > { %v348_v42 = vadd.f32 %v1407_v40, %v347_v41  ;;  %v1499_v43 = vpop.f32.mrb[3].mxu1 }
  0xf2   : > { %846 = vrot.lane.b32.xlu1 %v266_v13, %s1673_s17  ;;  %679 = vrot.lane.b32.xlu0 %v266_v13, %s1674_s18 }
  0xf3   : > { %1506 = vmatpush3.msra.mxu1 %v348_v42 }
  0xf4   : > { %1515 = vmatprep.subr.mxu1 %v1668_v6 }
  0xf6   : > { %844 = vrot.lane.b32.xlu0 %v266_v13, %s1675_s19 }
 0x15c   : > { %v514_v21 = vpop.permute.xlu1 %513  ;;  %v353_v22 = vpop.permute.xlu0 %352 }
 0x15d   : > { %1501 = vmatpush3.xpose.msk.msra.mxu0 %vm354_vm2, %v353_v22  ;;  %v1029_v22 = vld [vmem:[%s1912_s2 + $0x58] sm:$0xff] }
 0x15e   : > { %1510 = vmatprep.subr.mxu0 %v1668_v6 }
 0x160   : > { %1503 = vmatmul.mubr.msk.f32.vlgmr.msra.gmra.mrb[0].mxu0 %vm354_vm2, %v266_v13  ;;  %v516_v23 = vpop.permute.xlu0 %515  ;;  %v682_v24 = vpop.permute.xlu1 %681 }
 0x161   : > { %1511 = vmatpush3.xpose.msk.msra.mxu0 %vm354_vm2, %v516_v23  ;;  %1512 = vmatprep.mubr.msk.f32.mxu0 %vm1667_vm0, %v1668_v6  ;;  %v1597_v23 = vpack.c.bf16 %v1029_v22, %v1028_v20 }
 0x162   : > { %1520 = vmatprep.subr.mxu0 %v1668_v6 }
 0x164   : > { %1513 = vmatmul.mubr.msk.f32.vlgmr.msra.gmra.mrb[2].mxu0 %vm354_vm2, %v514_v21  ;;  %v680_v25 = vpop.permute.xlu0 %679  ;;  %v847_v26 = vpop.permute.xlu1 %846  ;;  %v1594_v21 = vpack.c.bf16 %v1027_v19, %v1026_v18 }
 0x165   : > { %1521 = vmatpush3.xpose.msk.msra.mxu0 %vm354_vm2, %v682_v24  ;;  %1522 = vmatprep.mubr.msk.f32.mxu0 %vm1667_vm0, %v1668_v6 }
 0x166   : > { %1530 = vmatprep.subr.mxu0 %v1668_v6 }
 0x168   : > { %1523 = vmatmul.mubr.msk.f32.vlgmr.msra.gmra.mrb[4].mxu0 %vm354_vm2, %v680_v25  ;;  %v845_v27 = vpop.permute.xlu0 %844 }
 0x169   : > { %1531 = vmatpush3.xpose.msk.msra.mxu0 %vm354_vm2, %v847_v26  ;;  %1532 = vmatprep.mubr.msk.f32.mxu0 %vm1667_vm0, %v1668_v6 }
 0x16a   : > { %1593 = vmatprep.subr.bf16.mxu0 %v1666_v3 }
 0x16c   : > { %1533 = vmatmul.mubr.msk.f32.vlgmr.msra.gmra.mrb[6].mxu0 %vm354_vm2, %v845_v27 }
 0x16d   : > { %1548 = vmatprep.mubr.msk.f32.mxu0 %vm1667_vm0, %v1668_v6  ;;  %1595 = vmatpush3.bf16.msra.mxu0 %v1594_v21 }
 0x16e   : > { %1596 = vmatprep.subr.bf16.mxu0 %v1666_v3 }
 0x171   : > { %1598 = vmatpush3.bf16.msra.mxu0 %v1597_v23 }
 0x172   : > { %1605 = vmatprep.subr.bf16.mxu0 %v1666_v3 }
 0x233   : > { %v425_v28 = vpop.f32.mrb[0].mxu0 }
 0x234   : > { %v1504_v29 = vpop.f32.mrb[1].mxu0  ;;  %v429_v30 = vsel %vm354_vm2, %v425_v28, -inf }
 0x235   : > { %430 = vmax.xlane.f32.xlu1 %v429_v30 }
 0x237   : > { %v587_v31 = vpop.f32.mrb[2].mxu0 }
 0x238   : > { %v1514_v32 = vpop.f32.mrb[3].mxu0  ;;  %v591_v33 = vsel %vm354_vm2, %v587_v31, -inf }
 0x239   : > { %592 = vmax.xlane.f32.xlu0 %v591_v33 }
 0x23b   : > { %v753_v34 = vpop.f32.mrb[4].mxu0 }
 0x23c   : > { %v1524_v35 = vpop.f32.mrb[5].mxu0  ;;  %v757_v36 = vsel %vm354_vm2, %v753_v34, -inf }
 0x23d   : > { %758 = vmax.xlane.f32.xlu0 %v757_v36 }
 0x23f   : > { %v918_v37 = vpop.f32.mrb[6].mxu0 }
 0x240   : > { %v1534_v38 = vpop.f32.mrb[7].mxu0  ;;  %v922_v39 = vsel %vm354_vm2, %v918_v37, -inf }
 0x241   : > { %923 = vmax.xlane.f32.xlu1 %v922_v39  ;;  %v1421_v38 = vld [vmem:[%s1912_s2 + $0xc2] ss:$0 sm:$0xff] }
 0x2c2   : > { %v431_v44 = vpop.xlane.xlu1 %430 }
 0x2c3   : > { %v432_v45 = vsub.f32 %v425_v28, %v431_v44 }
 0x2c5   : > { %v433_v46 = vmul.f32 1.442695, %v432_v45 }
 0x2c6   : > { %v593_v47 = vpop.xlane.xlu0 %592 }
 0x2c7   : > { %1638 = vpow2.f32 %v433_v46  ;;  %v594_v48 = vsub.f32 %v587_v31, %v593_v47 }
 0x2c9   : > { %v595_v49 = vmul.f32 1.442695, %v594_v48 }
 0x2ca   : > { %v759_v50 = vpop.xlane.xlu0 %758 }
 0x2cb   : > { %1640 = vpow2.f32 %v595_v49  ;;  %v760_v51 = vsub.f32 %v753_v34, %v759_v50  ;;  %v1136_v49 = vld [vmem:[%s1912_s2 + $0x68] sm:$0xff] }
 0x2cd   : > { %v761_v52 = vmul.f32 1.442695, %v760_v51  ;;  %v1138_v51 = vld [vmem:[%s1912_s2 + $0x78] sm:$0xff] }
 0x2ce   : > { %v924_v59 = vpop.xlane.xlu1 %923 }
 0x2cf   : > { %1642 = vpow2.f32 %v761_v52  ;;  %v925_v60 = vsub.f32 %v918_v37, %v924_v59  ;;  %v1222_v59 = vld [vmem:[%s1912_s2 + $0xa0] sm:$0xff] }
 0x2d1   : > { %v1639_v53 = vpop.eup %1638  ;;  %v926_v61 = vmul.f32 1.442695, %v925_v60  ;;  %v1223_v60 = vld [vmem:[%s1912_s2 + $0xa8] sm:$0xff] }
 0x2d2   : > { %v435_v54 = vsel %vm354_vm2, %v1639_v53, 0.0 }
 0x2d3   : > { %436 = vadd.xlane.f32.xlu0 %v435_v54  ;;  %1644 = vpow2.f32 %v926_v61  ;;  %v1219_v54 = vld [vmem:[%s1912_s2 + $0x88] sm:$0xff]  ;;  %v1612_v61 = vpack.c.bf16 %v1223_v60, %v1222_v59 }
 0x2d5   : > { %v1641_v55 = vpop.eup %1640 }
 0x2d6   : > { %v597_v56 = vsel %vm354_vm2, %v1641_v55, 0.0 }
 0x2d7   : > { %598 = vadd.xlane.f32.xlu1 %v597_v56 }
 0x2d9   : > { %v1643_v57 = vpop.eup %1642 }
 0x2da   : > { %v763_v58 = vsel %vm354_vm2, %v1643_v57, 0.0 }
 0x2db   : > { %764 = vadd.xlane.f32.xlu0 %v763_v58 }
 0x2dd   : > { %v1645_v62 = vpop.eup %1644 }
 0x2de   : > { %v928_v63 = vsel %vm354_vm2, %v1645_v62, 0.0 }
 0x2e8   : > { %768 = vrot.lane.b32.xlu1 %v348_v42, %s1674_s18 }
 0x2f1   : > { %603 = vrot.lane.b32.xlu0 %v348_v42, %s1669_s4  ;;  %s1676_s4 = smov 8  }
 0x30c   : > { %929 = vadd.xlane.f32.xlu1 %v928_v63 }
 0x31d   : > { %933 = vrot.lane.b32.xlu1 %v348_v42, %s1675_s19 }
 0x360   : > { %v437_v0 = vpop.xlane.xlu0 %436 }
 0x361   : > { %1646 = vrcp.f32 %v437_v0 }
 0x364   : > { %v599_v1 = vpop.xlane.xlu1 %598 }
 0x365   : > { %1648 = vrcp.f32 %v599_v1 }
 0x368   : > { %v765_v2 = vpop.xlane.xlu0 %764  ;;  %v769_v11 = vpop.permute.xlu1 %768 }
 0x369   : > { %1650 = vrcp.f32 %v765_v2  ;;  %v1423_v2 = vld [vmem:[%s1912_s2 + $0xc5] ss:$0 sm:$0xff] }
 0x36b   : > { %v1647_v4 = vpop.eup %1646 }
 0x36c   : > { %v439_v5 = vmul.f32 %v1647_v4, %v1639_v53  ;;  %v604_v7 = vpop.permute.xlu0 %603  ;;  %v1218_v53 = vld [vmem:[%s1912_s2 + $0x80] sm:$0xff] }
 0x36d   : > { %v1606_v56 = vpack.c.bf16 %v1219_v54, %v1218_v53 }
 0x36e   : > { %1508 = vmatmul.mubr.msk.f32.vlgmr.msra.gmra.mrb[4].mxu1 %vm354_vm2, %v439_v5  ;;  %v1424_v5 = vld [vmem:[%s1912_s2 + $0xc6] ss:$0 sm:$0xff] }
 0x36f   : > { %v1649_v9 = vpop.eup %1648  ;;  %1516 = vmatpush3.msra.mxu1 %v604_v7  ;;  %1517 = vmatprep.mubr.msk.f32.mxu1 %vm1667_vm0, %v1668_v6 }
 0x370   : > { %v601_v10 = vmul.f32 %v1649_v9, %v1641_v55  ;;  %1525 = vmatprep.subr.mxu1 %v1668_v6  ;;  %v1220_v55 = vld [vmem:[%s1912_s2 + $0x90] sm:$0xff] }
 0x372   : > { %1518 = vmatmul.mubr.msk.f32.vlgmr.msra.gmra.mrb[6].mxu1 %vm354_vm2, %v601_v10  ;;  %v1225_v10 = vld [vmem:[%s1912_s2 + $0xb8] sm:$0xff] }
 0x373   : > { %v1651_v12 = vpop.eup %1650  ;;  %1526 = vmatpush3.msra.mxu1 %v769_v11  ;;  %1527 = vmatprep.mubr.msk.f32.mxu1 %vm1667_vm0, %v1668_v6 }
 0x374   : > { %v767_v13 = vmul.f32 %v1651_v12, %v1643_v57  ;;  %1535 = vmatprep.subr.mxu1 %v1668_v6  ;;  %v1221_v57 = vld [vmem:[%s1912_s2 + $0x98] sm:$0xff]  ;;  %v1425_v12 = vld [vmem:[%s1912_s2 + $0xc3] ss:$0 sm:$0xff] }
 0x375   : > { %v1609_v58 = vpack.c.bf16 %v1221_v57, %v1220_v55 }
 0x376   : > { %1528 = vmatmul.mubr.msk.f32.vlgmr.msra.gmra.mrb[8].mxu1 %vm354_vm2, %v767_v13 }
 0x377   : > { %1537 = vmatprep.mubr.msk.f32.mxu1 %vm1667_vm0, %v1668_v6 }
 0x399   : > { %v930_v14 = vpop.xlane.xlu1 %929 }
 0x39a   : > { %1652 = vrcp.f32 %v930_v14 }
 0x39d   : > { %v934_v15 = vpop.permute.xlu1 %933 }
 0x39e   : > { %1536 = vmatpush3.msra.mxu1 %v934_v15 }
 0x39f   : > { %1599 = vmatprep.subr.bf16.mxu1 %v1666_v3 }
 0x3a4   : > { %v1653_v16 = vpop.eup %1652 }
 0x3a5   : > { %v932_v17 = vmul.f32 %v1653_v16, %v1645_v62 }
 0x3a7   : > { %1538 = vmatmul.mubr.msk.f32.vlgmr.msra.gmra.mrb[10].mxu1 %vm354_vm2, %v932_v17  ;;  %v1427_v17 = vld [vmem:[%s1912_s2 + $0xc4] ss:$0 sm:$0xff] }
 0x3a8   : > { %1559 = vmatprep.mubr.msk.f32.mxu1 %vm1667_vm0, %v1668_v6 }
 0x441   : > { %v509_v24 = vpop.f32.mrb[4].mxu1 }
 0x442   : > { %v1509_v25 = vpop.f32.mrb[5].mxu1 }
 0x445   : > { %v675_v26 = vpop.f32.mrb[6].mxu1 }
 0x446   : > { %1010 = vrot.lane.b32.xlu0 %v675_v26, %s1676_s4  ;;  %v1519_v27 = vpop.f32.mrb[7].mxu1 }
 0x449   : > { %v840_v28 = vpop.f32.mrb[8].mxu1 }
 0x44a   : > { %1014 = vrot.lane.b32.xlu1 %v840_v28, %s1677_s5  ;;  %v1529_v29 = vpop.f32.mrb[9].mxu1 }
 0x47a   : > { %v1005_v30 = vpop.f32.mrb[10].mxu1 }
 0x47b   : > { %1018 = vrot.lane.b32.xlu0 %v1005_v30, %s1678_s6  ;;  %v1539_v31 = vpop.f32.mrb[11].mxu1 }
 0x4b8   : > { %v1011_v32 = vpop.permute.xlu0 %1010 }
 0x4b9   : > { %v1021_v34 = vsel %vm354_vm2, %v509_v24, %v1011_v32  ;;  %v1429_v32 = vld [vmem:[%s1912_s2 + $0xc7] ss:$0 sm:$0xff] }
 0x4bc   : > { %v1015_v33 = vpop.permute.xlu1 %1014 }
 0x4bd   : > { %v1023_v35 = vsel %vm1022_vm3, %v1021_v34, %v1015_v33  ;;  %v1430_v34 = vld [vmem:[%s1912_s2 + $0xc8] ss:$0 sm:$0xff] }
 0x4ed   : > { %v1019_v36 = vpop.permute.xlu0 %1018 }
 0x4ee   : > { %v1025_v37 = vsel %vm1024_vm4, %v1023_v35, %v1019_v36 }
 0x4ef   : > { %1549 = vmatmul.mubr.msk.f32.vlgmr.msra.gmra.mrb[8].mxu0 %vm195_vm1, %v1025_v37 }
 0x4f0   : > { %1578 = vmatprep.mubr.msk.f32.mxu0 %vm1667_vm0, %v1668_v6  ;;  %v1135_v6 = vld [vmem:[%s1912_s2 + $0x60] sm:$0xff]  ;;  %1607 = vmatpush3.bf16.msra.mxu0 %v1606_v56 }
 0x4f1   : > { %v1600_v50 = vpack.c.bf16 %v1136_v49, %v1135_v6  ;;  %1608 = vmatprep.subr.bf16.mxu0 %v1666_v3 }
 0x4f3   : > { %1601 = vmatpush3.bf16.msra.mxu1 %v1600_v50 }
 0x4f4   : > { %1602 = vmatprep.subr.bf16.mxu1 %v1666_v3  ;;  %1610 = vmatpush3.bf16.msra.mxu0 %v1609_v58 }
 0x4f5   : > { %1611 = vmatprep.subr.bf16.mxu0 %v1666_v3 }
 0x4f8   : > { %1613 = vmatpush3.bf16.msra.mxu0 %v1612_v61 }
 0x4f9   : > { %1614 = vmatprep.subr.bf16.mxu0 %v1666_v3  ;;  %v1224_v3 = vld [vmem:[%s1912_s2 + $0xb0] sm:$0xff] }
 0x4fa   : > { %v1615_v11 = vpack.c.bf16 %v1225_v10, %v1224_v3 }
 0x4fc   : > { %1616 = vmatpush3.bf16.msra.mxu0 %v1615_v11 }
 0x5c2   : > { %v1104_v39 = vpop.f32.mrb[8].mxu0 }
 0x5c3   : > { %v1105_v40 = vadd.f32 %v1421_v38, %v1104_v39  ;;  %v1550_v41 = vpop.f32.mrb[9].mxu0 }
 0x5c5   : > { %v1108_v42 = vadd.f32 %v1105_v40, %v1736_v8  ;;  %v1137_v8 = vld [vmem:[%s1912_s2 + $0x70] sm:$0xff] }
 0x5c6   : > { %v1603_v52 = vpack.c.bf16 %v1138_v51, %v1137_v8 }
 0x5c7   : > { %v1109_v43 = vsel %vm195_vm1, %v1108_v42, 0.0 }
 0x5c8   : > { %1110 = vadd.xlane.f32.xlu1 %v1109_v43  ;;  %1604 = vmatpush3.bf16.msra.mxu1 %v1603_v52 }
 0x655   : > { %v1111_v44 = vpop.xlane.xlu1 %1110 }
 0x656   : > { %v1113_v45 = vmul.f32 0.03125, %v1111_v44 }
 0x658   : > { %v1114_v46 = vsub.f32 %v1108_v42, %v1113_v45 }
 0x65a   : > { %v1115_v47 = vmul.f32 %v1114_v46, %v1114_v46 }
 0x65c   : > { %v1116_v48 = vsel %vm195_vm1, %v1115_v47, 0.0 }
 0x65d   : > { %1117 = vadd.xlane.f32.xlu0 %v1116_v48 }
 0x6ea   : > { %v1118_v62 = vpop.xlane.xlu0 %1117 }
 0x6eb   : > { %v1119_v63 = vmul.f32 0.03125, %v1118_v62 }
 0x6ed   : > { %v1120_v0 = vadd.f32 1e-05, %v1119_v63 }
 0x6ef   : > { %1654 = vrsqrt.f32 %v1120_v0 }
 0x6f9   : > { %v1655_v1 = vpop.eup %1654 }
 0x6fa   : > { %v1122_v4 = vmul.f32 %v1655_v1, %v1114_v46 }
 0x6fc   : > { %v1128_v7 = vmul.f32 %v1423_v2, %v1122_v4 }
 0x6fe   : > { %v1134_v9 = vadd.f32 %v1424_v5, %v1128_v7 }
 0x700   : > { %1560 = vmatmul.mubr.msk.f32.vlgmr.msra.gmra.mrb[12].mxu1 %vm195_vm1, %v1134_v9 }
 0x7d3   : > { %v1213_v13 = vpop.f32.mrb[12].mxu1 }
 0x7d4   : > { %v1214_v14 = vadd.f32 %v1425_v12, %v1213_v13  ;;  %v1561_v15 = vpop.f32.mrb[13].mxu1 }
 0x7d6   : > { %v1217_v16 = vmax.f32 %v1214_v14, 0.0 }
 0x7d8   : > { %1579 = vmatmul.mubr.msk.f32.vlgmr.msra.gmra.mrb[10].mxu0 %vm1231_vm5, %v1217_v16 }
 0x8ab   : > { %v1301_v18 = vpop.f32.mrb[10].mxu0 }
 0x8ac   : > { %v1302_v19 = vadd.f32 %v1427_v17, %v1301_v18  ;;  %v1580_v20 = vpop.f32.mrb[11].mxu0 }
 0x8ae   : > { %v1305_v21 = vadd.f32 %v1302_v19, %v1134_v9 }
 0x8b0   : > { %v1306_v22 = vsel %vm195_vm1, %v1305_v21, 0.0 }
 0x8b1   : > { %1307 = vadd.xlane.f32.xlu0 %v1306_v22 }
 0x93e   : > { %v1308_v23 = vpop.xlane.xlu0 %1307 }
 0x93f   : > { %v1309_v24 = vmul.f32 0.03125, %v1308_v23 }
 0x941   : > { %v1310_v25 = vsub.f32 %v1305_v21, %v1309_v24 }
 0x943   : > { %v1311_v26 = vmul.f32 %v1310_v25, %v1310_v25 }
 0x945   : > { %v1312_v27 = vsel %vm195_vm1, %v1311_v26, 0.0 }
 0x946   : > { %1313 = vadd.xlane.f32.xlu1 %v1312_v27 }
 0x9d3   : > { %v1314_v28 = vpop.xlane.xlu1 %1313 }
 0x9d4   : > { %v1315_v29 = vmul.f32 0.03125, %v1314_v28 }
 0x9d6   : > { %v1316_v30 = vadd.f32 1e-05, %v1315_v29 }
 0x9d8   : > { %1656 = vrsqrt.f32 %v1316_v30 }
 0x9e2   : > { %v1657_v31 = vpop.eup %1656 }
 0x9e3   : > { %v1318_v33 = vmul.f32 %v1657_v31, %v1310_v25 }
 0x9e5   : > { %v1324_v35 = vmul.f32 %v1429_v32, %v1318_v33 }
 0x9e7   : > { %v1330_v36 = vadd.f32 %v1430_v34, %v1324_v35 }
 0x9e9   : > { %1331 = vst.msk [vmem:[%s182_s24] sm:$0xff] %vm195_vm1, %v1330_v36 }
 0x9ea PF: > { %s13_s12 = sadd.s32 1, %s1664_s12  }
 0x9eb   : > { %p10_p4 = scmp.ge.s32.totalorder %s13_s12, 4  }
 0x9ed   :  { %12 = sbr.rel (!%p10_p4) target bundleno = 1 (0x1), region = 65 }

</bundles_post_ra>
